<compile_context>
chip_gen: v7x
topology: tpu7x:2x2x1
jax: 0.10.0
libtpu: 0.0.40
codegen_flags: <defaults>
</compile_context>

<pallas_src>
import functools
import math

import jax
import jax.numpy as jnp
from jax import lax
from jax.experimental import pallas as pl
from jax.experimental.pallas import tpu as pltpu


def _round_up(x, m):
    return (x + m - 1) // m * m


def _mlp_kernel(n_layers, x_ref, w1_ref, b1_ref, wh_ref, bh_ref, wl_ref, bl_ref, out_ref):
    # First linear (NO activation afterwards — matches MLP.forward).
    h = jnp.dot(x_ref[...], w1_ref[...], preferred_element_type=jnp.float32) + b1_ref[...]

    # Hidden MLPlayer blocks: Linear + ReLU (use_bn=False default -> no batch norm).
    def layer_body(i, h):
        hi = jnp.dot(h.astype(wh_ref.dtype), wh_ref[i],
                     preferred_element_type=jnp.float32) + bh_ref[i]
        return jnp.maximum(hi, 0.0)

    if n_layers > 0:
        h = lax.fori_loop(0, n_layers, layer_body, h, unroll=(n_layers <= 8))

    # Last linear (hidden -> 1): VPU multiply + cross-lane (XLU) reduce, not a 1-col matmul.
    out = jnp.sum(h * wl_ref[...], axis=-1, keepdims=True) + bl_ref[...]
    out_ref[...] = out.astype(out_ref.dtype)


def mlp_forward(x, params, *, compute_dtype=jnp.bfloat16, batch_tile=256):
    """Fused MLP forward. Pads features to 128 lanes / batch to the tile size, tiles batch."""
    w1, b1, wh, bh, wl, bl = params
    batch, input_size = x.shape
    hidden_size = w1.shape[1]
    n_layers = wh.shape[0]

    Kp = _round_up(input_size, 128)
    Hp = _round_up(hidden_size, 128)
    TB = batch_tile if batch >= batch_tile else _round_up(max(batch, 1), 16)
    Bp = _round_up(batch, TB)
    Lp = max(n_layers, 1)

    cd = jnp.dtype(compute_dtype)

    # Zero-padding is exact: padded lanes contribute exact zeros to every dot/reduce.
    xp = jnp.zeros((Bp, Kp), cd).at[:batch, :input_size].set(x.astype(cd))
    w1p = jnp.zeros((Kp, Hp), cd).at[:input_size, :hidden_size].set(w1.astype(cd))
    b1p = jnp.zeros((1, Hp), jnp.float32).at[:, :hidden_size].set(
        jnp.asarray(b1, jnp.float32).reshape(1, hidden_size))
    whp = jnp.zeros((Lp, Hp, Hp), cd)
    bhp = jnp.zeros((Lp, 1, Hp), jnp.float32)
    if n_layers > 0:
        whp = whp.at[:n_layers, :hidden_size, :hidden_size].set(wh.astype(cd))
        bhp = bhp.at[:n_layers, :, :hidden_size].set(
            jnp.asarray(bh, jnp.float32).reshape(n_layers, 1, hidden_size))
    wlp = jnp.zeros((1, Hp), jnp.float32).at[:, :hidden_size].set(
        jnp.asarray(wl, jnp.float32).reshape(1, hidden_size))
    blp = jnp.asarray(bl, jnp.float32).reshape(1, 1)

    grid = (Bp // TB,)

    in_specs = [
        pl.BlockSpec((TB, Kp), lambda i: (i, 0)),          # x: batch-tiled
        pl.BlockSpec((Kp, Hp), lambda i: (0, 0)),          # W1: VMEM-resident
        pl.BlockSpec((1, Hp), lambda i: (0, 0)),           # b1
        pl.BlockSpec((Lp, Hp, Hp), lambda i: (0, 0, 0)),   # stacked hidden weights
        pl.BlockSpec((Lp, 1, Hp), lambda i: (0, 0, 0)),    # stacked hidden biases
        pl.BlockSpec((1, Hp), lambda i: (0, 0)),           # last-layer weight as a row
        pl.BlockSpec((1, 1), lambda i: (0, 0)),            # last-layer bias
    ]
    out_spec = pl.BlockSpec((TB, 1), lambda i: (i, 0))

    # VMEM budget: per-step block bytes, x2 for double buffering, + headroom; clamp for v7x.
    isz = cd.itemsize
    block_bytes = (TB * Kp * isz + Kp * Hp * isz + Hp * 4
                   + Lp * Hp * Hp * isz + Lp * Hp * 4 + Hp * 4 + 4 + TB * 4)
    vmem_limit = int(min(64 * 2**20, 2 * block_bytes + 8 * 2**20))

    out = pl.pallas_call(
        functools.partial(_mlp_kernel, n_layers),
        out_shape=jax.ShapeDtypeStruct((Bp, 1), jnp.float32),
        grid=grid,
        in_specs=in_specs,
        out_specs=out_spec,
        compiler_params=pltpu.CompilerParams(
            dimension_semantics=("parallel",),
            vmem_limit_bytes=vmem_limit,
        ),
    )(xp, w1p, b1p, whp, bhp, wlp, blp)
    return out[:batch]


def init_params(key, input_size, hidden_size, n_layers):
    """Deterministic init mimicking torch.nn.Linear default (uniform +/- 1/sqrt(fan_in))."""
    ks = jax.random.split(key, 6)

    def u(k, shape, fan_in):
        bound = 1.0 / math.sqrt(fan_in)
        return jax.random.uniform(k, shape, jnp.float32, -bound, bound)

    w1 = u(ks[0], (input_size, hidden_size), input_size)               # linear1st.weight^T
    b1 = u(ks[1], (1, hidden_size), input_size)                        # linear1st.bias
    wh = u(ks[2], (n_layers, hidden_size, hidden_size), hidden_size)   # MLPlayer weights^T
    bh = u(ks[3], (n_layers, 1, hidden_size), hidden_size)             # MLPlayer biases
    wl = u(ks[4], (hidden_size, 1), hidden_size)                       # linearLast.weight^T
    bl = u(ks[5], (1, 1), hidden_size)                                 # linearLast.bias
    return w1, b1, wh, bh, wl, bl


def mlp_reference(x, params, compute_dtype=jnp.float32):
    """Pure-JAX reference matching the PyTorch forward (optionally bf16 MXU feeds)."""
    w1, b1, wh, bh, wl, bl = params
    cd = compute_dtype
    h = jnp.dot(x.astype(cd), w1.astype(cd), preferred_element_type=jnp.float32) + b1
    for i in range(wh.shape[0]):
        h = jnp.dot(h.astype(cd), wh[i].astype(cd),
                    preferred_element_type=jnp.float32) + bh[i]
        h = jnp.maximum(h, 0.0)
    return h @ wl + bl


if __name__ == "__main__":
    batch, input_size, hidden_size, n_layers = 8, 16, 32, 2

    key = jax.random.PRNGKey(0)
    kx, kp = jax.random.split(key)
    x = jax.random.normal(kx, (batch, input_size), dtype=jnp.float32)
    params = init_params(kp, input_size, hidden_size, n_layers)

    out = jax.block_until_ready(mlp_forward(x, params))

    ref_bf16 = mlp_reference(x, params, compute_dtype=jnp.bfloat16)  # matches kernel MXU feed
    ref_f32 = mlp_reference(x, params, compute_dtype=jnp.float32)    # module semantics in f32

    assert out.shape == (batch, 1), out.shape
    assert jnp.allclose(out, ref_bf16, atol=2e-3, rtol=2e-3), (out, ref_bf16)
    assert jnp.allclose(out, ref_f32, atol=5e-2, rtol=5e-2), (out, ref_f32)
    print("KERNEL_OK")
</pallas_src>

<mosaic_0001>
module attributes {stable_mosaic.version = 11 : i64} {
  func.func @_mlp_kernel(%arg0: i32, %arg1: memref<16x128xbf16, #tpu.memory_space<vmem>>, %arg2: memref<128x128xbf16, #tpu.memory_space<vmem>>, %arg3: memref<1x128xf32, #tpu.memory_space<vmem>>, %arg4: memref<2x128x128xbf16, #tpu.memory_space<vmem>>, %arg5: memref<2x1x128xf32, #tpu.memory_space<vmem>>, %arg6: memref<1x128xf32, #tpu.memory_space<vmem>>, %arg7: memref<1x1xf32, #tpu.memory_space<vmem>>, %arg8: memref<16x1xf32, #tpu.memory_space<vmem>>) attributes {dimension_semantics = [#tpu.dimension_semantics<parallel>], iteration_bounds = array<i64: 1>, scalar_prefetch = 0 : i64, scratch_operands = 0 : i64, tpu.core_type = #tpu.core_type<tc>, window_params = [{transform_indices = @transform_0, window_bounds = array<i64: 16, 128>}, {pipeline_mode = #tpu.pipeline_mode<synchronous>, transform_indices = @transform_1, window_bounds = array<i64: 128, 128>}, {pipeline_mode = #tpu.pipeline_mode<synchronous>, transform_indices = @transform_2, window_bounds = array<i64: 1, 128>}, {pipeline_mode = #tpu.pipeline_mode<synchronous>, transform_indices = @transform_3, window_bounds = array<i64: 2, 128, 128>}, {pipeline_mode = #tpu.pipeline_mode<synchronous>, transform_indices = @transform_4, window_bounds = array<i64: 2, 1, 128>}, {pipeline_mode = #tpu.pipeline_mode<synchronous>, transform_indices = @transform_5, window_bounds = array<i64: 1, 128>}, {pipeline_mode = #tpu.pipeline_mode<synchronous>, transform_indices = @transform_6, window_bounds = array<i64: 1, 1>}, {transform_indices = @transform_7, window_bounds = array<i64: 16, 1>}]} {
    %c0 = arith.constant 0 : index
    %c0_0 = arith.constant 0 : index
    %0 = vector.load %arg1[%c0, %c0_0] : memref<16x128xbf16, #tpu.memory_space<vmem>>, vector<16x128xbf16>
    %c0_1 = arith.constant 0 : index
    %c0_2 = arith.constant 0 : index
    %1 = vector.load %arg2[%c0_1, %c0_2] : memref<128x128xbf16, #tpu.memory_space<vmem>>, vector<128x128xbf16>
    %cst = arith.constant dense<0.000000e+00> : vector<16x128xf32>
    %2 = tpu.matmul %0, %1, %cst {dimension_numbers = #tpu.dot_dimension_numbers<[1], [0], [0], [1], [0, 0, 1, 1], [], []>} : vector<16x128xbf16>, vector<128x128xbf16>, vector<16x128xf32> -> vector<16x128xf32>
    %c0_3 = arith.constant 0 : index
    %c0_4 = arith.constant 0 : index
    %3 = vector.load %arg3[%c0_3, %c0_4] : memref<1x128xf32, #tpu.memory_space<vmem>>, vector<1x128xf32>
    %4 = vector.broadcast %3 : vector<1x128xf32> to vector<16x128xf32>
    %5 = arith.addf %2, %4 : vector<16x128xf32>
    %c0_i32 = arith.constant 0 : i32
    %6 = arith.truncf %5 : vector<16x128xf32> to vector<16x128xbf16>
    %7 = arith.index_cast %c0_i32 : i32 to index
    %c0_5 = arith.constant 0 : index
    %c0_6 = arith.constant 0 : index
    %8 = vector.load %arg4[%7, %c0_5, %c0_6] : memref<2x128x128xbf16, #tpu.memory_space<vmem>>, vector<1x128x128xbf16>
    %9 = vector.shape_cast %8 : vector<1x128x128xbf16> to vector<128x128xbf16>
    %cst_7 = arith.constant dense<0.000000e+00> : vector<16x128xf32>
    %10 = tpu.matmul %6, %9, %cst_7 {dimension_numbers = #tpu.dot_dimension_numbers<[1], [0], [0], [1], [0, 0, 1, 1], [], []>} : vector<16x128xbf16>, vector<128x128xbf16>, vector<16x128xf32> -> vector<16x128xf32>
    %11 = arith.index_cast %c0_i32 : i32 to index
    %c0_8 = arith.constant 0 : index
    %c0_9 = arith.constant 0 : index
    %12 = vector.load %arg5[%11, %c0_8, %c0_9] : memref<2x1x128xf32, #tpu.memory_space<vmem>>, vector<1x1x128xf32>
    %13 = vector.shape_cast %12 : vector<1x1x128xf32> to vector<1x128xf32>
    %14 = vector.broadcast %13 : vector<1x128xf32> to vector<16x128xf32>
    %15 = arith.addf %10, %14 : vector<16x128xf32>
    %cst_10 = arith.constant 0.000000e+00 : f32
    %16 = vector.broadcast %cst_10 : f32 to vector<16x128xf32>
    %17 = arith.maximumf %15, %16 : vector<16x128xf32>
    %c1_i32 = arith.constant 1 : i32
    %18 = arith.truncf %17 : vector<16x128xf32> to vector<16x128xbf16>
    %19 = arith.index_cast %c1_i32 : i32 to index
    %c0_11 = arith.constant 0 : index
    %c0_12 = arith.constant 0 : index
    %20 = vector.load %arg4[%19, %c0_11, %c0_12] : memref<2x128x128xbf16, #tpu.memory_space<vmem>>, vector<1x128x128xbf16>
    %21 = vector.shape_cast %20 : vector<1x128x128xbf16> to vector<128x128xbf16>
    %cst_13 = arith.constant dense<0.000000e+00> : vector<16x128xf32>
    %22 = tpu.matmul %18, %21, %cst_13 {dimension_numbers = #tpu.dot_dimension_numbers<[1], [0], [0], [1], [0, 0, 1, 1], [], []>} : vector<16x128xbf16>, vector<128x128xbf16>, vector<16x128xf32> -> vector<16x128xf32>
    %23 = arith.index_cast %c1_i32 : i32 to index
    %c0_14 = arith.constant 0 : index
    %c0_15 = arith.constant 0 : index
    %24 = vector.load %arg5[%23, %c0_14, %c0_15] : memref<2x1x128xf32, #tpu.memory_space<vmem>>, vector<1x1x128xf32>
    %25 = vector.shape_cast %24 : vector<1x1x128xf32> to vector<1x128xf32>
    %26 = vector.broadcast %25 : vector<1x128xf32> to vector<16x128xf32>
    %27 = arith.addf %22, %26 : vector<16x128xf32>
    %cst_16 = arith.constant 0.000000e+00 : f32
    %28 = vector.broadcast %cst_16 : f32 to vector<16x128xf32>
    %29 = arith.maximumf %27, %28 : vector<16x128xf32>
    %c2_i32 = arith.constant 2 : i32
    %c0_17 = arith.constant 0 : index
    %c0_18 = arith.constant 0 : index
    %30 = vector.load %arg6[%c0_17, %c0_18] : memref<1x128xf32, #tpu.memory_space<vmem>>, vector<1x128xf32>
    %31 = vector.broadcast %30 : vector<1x128xf32> to vector<16x128xf32>
    %32 = arith.mulf %29, %31 : vector<16x128xf32>
    %cst_19 = arith.constant dense<0.000000e+00> : vector<16xf32>
    %33 = vector.multi_reduction <add>, %32, %cst_19 [1] : vector<16x128xf32> to vector<16xf32>
    %34 = vector.shape_cast %33 : vector<16xf32> to vector<16x1xf32>
    %c0_20 = arith.constant 0 : index
    %c0_21 = arith.constant 0 : index
    %35 = vector.load %arg7[%c0_20, %c0_21] : memref<1x1xf32, #tpu.memory_space<vmem>>, vector<1x1xf32>
    %36 = vector.broadcast %35 : vector<1x1xf32> to vector<16x1xf32>
    %37 = arith.addf %34, %36 : vector<16x1xf32>
    %c0_22 = arith.constant 0 : index
    %c0_23 = arith.constant 0 : index
    %38 = vector.load %arg8[%c0_22, %c0_23] : memref<16x1xf32, #tpu.memory_space<vmem>>, vector<16x1xf32>
    tpu.vector_store %arg8[%c0_22, %c0_23], %37 {strides = array<i32>} : memref<16x1xf32, #tpu.memory_space<vmem>>, vector<16x1xf32>,
    return
  }
  func.func @transform_0(%arg0: i32) -> (i32, i32) {
    %c0_i32 = arith.constant 0 : i32
    %c0_i32_0 = arith.constant 0 : i32
    return %arg0, %c0_i32 : i32, i32
  }
  func.func @transform_1(%arg0: i32) -> (i32, i32) {
    %c0_i32 = arith.constant 0 : i32
    %c0_i32_0 = arith.constant 0 : i32
    %c0_i32_1 = arith.constant 0 : i32
    return %c0_i32, %c0_i32_0 : i32, i32
  }
  func.func @transform_2(%arg0: i32) -> (i32, i32) {
    %c0_i32 = arith.constant 0 : i32
    %c0_i32_0 = arith.constant 0 : i32
    %c0_i32_1 = arith.constant 0 : i32
    return %c0_i32, %c0_i32_0 : i32, i32
  }
  func.func @transform_3(%arg0: i32) -> (i32, i32, i32) {
    %c0_i32 = arith.constant 0 : i32
    %c0_i32_0 = arith.constant 0 : i32
    %c0_i32_1 = arith.constant 0 : i32
    %c0_i32_2 = arith.constant 0 : i32
    return %c0_i32, %c0_i32_0, %c0_i32_1 : i32, i32, i32
  }
  func.func @transform_4(%arg0: i32) -> (i32, i32, i32) {
    %c0_i32 = arith.constant 0 : i32
    %c0_i32_0 = arith.constant 0 : i32
    %c0_i32_1 = arith.constant 0 : i32
    %c0_i32_2 = arith.constant 0 : i32
    return %c0_i32, %c0_i32_0, %c0_i32_1 : i32, i32, i32
  }
  func.func @transform_5(%arg0: i32) -> (i32, i32) {
    %c0_i32 = arith.constant 0 : i32
    %c0_i32_0 = arith.constant 0 : i32
    %c0_i32_1 = arith.constant 0 : i32
    return %c0_i32, %c0_i32_0 : i32, i32
  }
  func.func @transform_6(%arg0: i32) -> (i32, i32) {
    %c0_i32 = arith.constant 0 : i32
    %c0_i32_0 = arith.constant 0 : i32
    %c0_i32_1 = arith.constant 0 : i32
    return %c0_i32, %c0_i32_0 : i32, i32
  }
  func.func @transform_7(%arg0: i32) -> (i32, i32) {
    %c0_i32 = arith.constant 0 : i32
    %c0_i32_0 = arith.constant 0 : i32
    return %arg0, %c0_i32 : i32, i32
  }
}

</mosaic_0001>

<bundles_post_ra>
// kernel: tpu_custom_call.1
= control target key start
LH: loop header
LB: loop body
LE: loop exit
PB: predicated region body
PF: predicated region fallthrough
CT: control target
= control target key end

     0   :  { %s823_s0 = inlined_call_operand.hbm [shape: bf16[16,128], index: 0, kind: input, shape index: {}]   ;;  %s824_s1 = inlined_call_operand.hbm [shape: bf16[128,128], index: 1, kind: input, shape index: {}]   ;;  %s825_s2 = inlined_call_operand.vmem [shape: f32[1,128], index: 2, kind: input, shape index: {}]   ;;  %s826_s3 = inlined_call_operand.hbm [shape: bf16[2,128,128], index: 3, kind: input, shape index: {}]   ;;  %s827_s4 = inlined_call_operand.vmem [shape: f32[2,1,128], index: 4, kind: input, shape index: {}]   ;;  %s828_s5 = inlined_call_operand.vmem [shape: f32[1,128], index: 5, kind: input, shape index: {}]   ;;  %s829_s6 = inlined_call_operand.<no memory space> [shape: f32[1,1], index: 6, kind: input, shape index: {}]   ;;  %s830_s7 = inlined_call_operand.vmem [shape: f32[16,1], index: 7, kind: output, shape index: {}]  }
   0x1   :  { %v12_v0 = vstv %s829_s6 }
   0x2   :  { %13 = vst [vmem:[#allocation2] sm:$0x1] %v12_v0 }
   0x3   :  { %14 = vsyncpa [#allocation4], 0 }
   0x4   :  { %15 = vsyncpa [#allocation6], 0  ;;  %s673_s26 = smov [#allocation5]   ;;  %s674_s28 = smov [#allocation3]  }
   0x5   :  { %s33_s27 = sshll.u32 %s673_s26, 4  ;;  %s21_s29 = sshll.u32 %s674_s28, 4  ;;  %s34_s27 = int_to_ptr.vmem [resolvable:$true] %s33_s27  ;;  %s723_s29 = int_to_ptr.vmem [resolvable:$true] %s21_s29 }
   0x6   :  { %s603_s9 = scalar_lea.hbm %s824_s1, 1024 }
   0x7   :  { %p604_p0 = scmp.ne.s32.totalorder %s824_s1, %s603_s9  ;;  %p607_p1 = scmp.lt.u32.totalorder %s603_s9, %s824_s1 }
   0x9   :  { %p609_p2 = pnand %p607_p1, %p604_p0 }
   0xb   :  { %612 = shalt.err (!%p609_p2)
}
   0xc   :  { %s613_s13 = scalar_lea.vmem %s34_s27, 1024  ;;  %p618_p4 = scmp.lt.s32.totalorder %s34_s27, %s34_s27 }
   0xd   :  { %p614_p3 = scmp.ne.s32.totalorder %s34_s27, %s613_s13  ;;  %p619_p5 = scmp.lt.s32.totalorder %s613_s13, %s613_s13 }
   0xf   :  { %p620_p6 = por %p619_p5, %p618_p4 }
  0x11   :  { %p621_p7 = pnand %p620_p6, %p614_p3 }
  0x13   :  { %624 = shalt.err (!%p621_p7)
}
  0x14   :  { %s675_s14 = smov 64   ;;  %s676_s15 = smov 4  }
  0x15   :  { %39 = dma.hbm_to_vmem [thread:$0]  %s824_s1, 1024, %s34_s27, [#allocation6], %s675_s14, %s675_s14, %s676_s15  }
  0x16   :  { %s625_s20 = scalar_lea.hbm %s823_s0, 128 }
  0x17   :  { %p626_p8 = scmp.ne.s32.totalorder %s823_s0, %s625_s20  ;;  %p629_p9 = scmp.lt.u32.totalorder %s625_s20, %s823_s0 }
  0x19   :  { %p631_p10 = pnand %p629_p9, %p626_p8 }
  0x1b   :  { %634 = shalt.err (!%p631_p10)
}
  0x1c   :  { %s635_s25 = scalar_lea.vmem %s723_s29, 128  ;;  %p640_p12 = scmp.lt.s32.totalorder %s723_s29, %s723_s29 }
  0x1d   :  { %p636_p11 = scmp.ne.s32.totalorder %s723_s29, %s635_s25  ;;  %p641_p13 = scmp.lt.s32.totalorder %s635_s25, %s635_s25 }
  0x1f   :  { %p642_p0 = por %p641_p13, %p640_p12 }
  0x21   :  { %p643_p1 = pnand %p642_p0, %p636_p11 }
  0x23   :  { %646 = shalt.err (!%p643_p1)
}
  0x24   :  { %27 = dma.hbm_to_vmem [thread:$0]  %s823_s0, 128, %s723_s29, [#allocation4], %s675_s14, %s675_s14, %s676_s15  }
  0x25   :  { %s677_s27 = smov [#allocation7]   ;;  %s647_s9 = scalar_lea.hbm %s826_s3, 2048 }
  0x26   :  { %s47_s28 = sshll.u32 %s677_s27, 4  ;;  %p648_p2 = scmp.ne.s32.totalorder %s826_s3, %s647_s9  ;;  %s48_s28 = int_to_ptr.vmem [resolvable:$true] %s47_s28 }
  0x27   :  { %p651_p3 = scmp.lt.u32.totalorder %s647_s9, %s826_s3 }
  0x29   :  { %p653_p4 = pnand %p651_p3, %p648_p2 }
  0x2b   :  { %656 = shalt.err (!%p653_p4)
}
  0x2c   :  { %s657_s13 = scalar_lea.vmem %s48_s28, 2048  ;;  %p662_p6 = scmp.lt.s32.totalorder %s48_s28, %s48_s28 }
  0x2d   :  { %p658_p5 = scmp.ne.s32.totalorder %s48_s28, %s657_s13  ;;  %p663_p7 = scmp.lt.s32.totalorder %s657_s13, %s657_s13 }
  0x2f   :  { %p664_p8 = por %p663_p7, %p662_p6 }
  0x31   :  { %p665_p9 = pnand %p664_p8, %p658_p5 }
  0x33   :  { %668 = shalt.err (!%p665_p9)
}
  0x34   :  { %53 = dma.hbm_to_vmem [thread:$0]  %s826_s3, 2048, %s48_s28, [#allocation6], %s675_s14, %s675_s14, %s676_s15  }
  0x35   :  { %669 = dma.done.wait [#allocation4], 128  }
  0x36   :  { %670 = vsyncadd [#allocation4], 4294967168 }
  0x37   :  { %671 = dma.done.wait [#allocation6], 3072  }
  0x38   :  { %672 = vsyncadd [#allocation6], 4294964224  ;;  %v678_v1 = vmov 0.0   ;;  %vm679_vm0 = vmmov 0   ;;  %v578_v2 = vld [vmem:[#allocation5] sm:$0xff]   ;;  %v579_v3 = vld [vmem:[#allocation5 + $0x8] sm:$0xff]  }
  0x39   :  { %511 = vmatprep.subr.bf16.mxu0 %v678_v1  ;;  %527 = vmatprep.mubr.msk.bf16.mxu0 %vm679_vm0, %v678_v1  ;;  %v580_v4 = vld [vmem:[#allocation5 + $0x10] sm:$0xff]   ;;  %v587_v5 = vld [vmem:[#allocation7] sm:$0xff]   ;;  %v581_v6 = vld [vmem:[#allocation5 + $0x18] sm:$0xff]   ;;  %vm444_vm1 = vcmask 7168  }
  0x3a   :  { %531 = vmatprep.subr.bf16.mxu1 %v678_v1  ;;  %547 = vmatprep.mubr.msk.bf16.mxu1 %vm679_vm0, %v678_v1  ;;  %v588_v7 = vld [vmem:[#allocation7 + $0x8] sm:$0xff]   ;;  %v582_v8 = vld [vmem:[#allocation5 + $0x20] sm:$0xff]   ;;  %v589_v9 = vld [vmem:[#allocation7 + $0x10] sm:$0xff]  }
  0x3b   :  { %512 = vmatpush3.bf16.msra.mxu0 %v578_v2  ;;  %532 = vmatpush3.bf16.msra.mxu1 %v587_v5  ;;  %v583_v10 = vld [vmem:[#allocation5 + $0x28] sm:$0xff]   ;;  %v590_v11 = vld [vmem:[#allocation7 + $0x18] sm:$0xff]   ;;  %v584_v12 = vld [vmem:[#allocation5 + $0x30] sm:$0xff]  }
  0x3c   :  { %513 = vmatprep.subr.bf16.mxu0 %v678_v1  ;;  %533 = vmatprep.subr.bf16.mxu1 %v678_v1  ;;  %v591_v13 = vld [vmem:[#allocation7 + $0x20] sm:$0xff]   ;;  %v585_v14 = vld [vmem:[#allocation5 + $0x38] sm:$0xff]   ;;  %v592_v15 = vld [vmem:[#allocation7 + $0x28] sm:$0xff]  }
  0x3d   :  { %v586_v16 = vld [vmem:[#allocation3] sm:$0xff]   ;;  %v593_v17 = vld [vmem:[#allocation7 + $0x30] sm:$0xff]   ;;  %v595_v19 = vld [vmem:[#allocation7 + $0x40] sm:$0xff]  }
  0x3e   :  { %v594_v18 = vld [vmem:[#allocation7 + $0x38] sm:$0xff]   ;;  %v596_v20 = vld [vmem:[#allocation7 + $0x48] sm:$0xff]   ;;  %v597_v21 = vld [vmem:[#allocation7 + $0x50] sm:$0xff]  }
  0x3f   :  { %514 = vmatpush3.bf16.msra.mxu0 %v579_v3  ;;  %534 = vmatpush3.bf16.msra.mxu1 %v588_v7  ;;  %v598_v22 = vld [vmem:[#allocation7 + $0x58] sm:$0xff]   ;;  %v599_v23 = vld [vmem:[#allocation7 + $0x60] sm:$0xff]   ;;  %v600_v24 = vld [vmem:[#allocation7 + $0x68] sm:$0xff]  }
  0x40   :  { %515 = vmatprep.subr.bf16.mxu0 %v678_v1  ;;  %535 = vmatprep.subr.bf16.mxu1 %v678_v1  ;;  %v453_v25 = vld [vmem:[%s825_s2] ss:$0 sm:$0xff]  ;;  %v602_v34 = vld [vmem:[#allocation7 + $0x78] sm:$0xff]  }
  0x41   :  { %v601_v33 = vld [vmem:[#allocation7 + $0x70] sm:$0xff]   ;;  %v473_v45 = vld [vmem:[%s827_s4 + $0x1] ss:$0 sm:$0xff] }
  0x42   :  { %v463_v35 = vld [vmem:[%s827_s4] ss:$0 sm:$0xff] }
  0x43   :  { %516 = vmatpush3.bf16.msra.mxu0 %v580_v4  ;;  %536 = vmatpush3.bf16.msra.mxu1 %v589_v9  ;;  %v482_v50 = vld [vmem:[%s828_s5] ss:$0 sm:$0xff] }
  0x44   :  { %517 = vmatprep.subr.bf16.mxu0 %v678_v1  ;;  %537 = vmatprep.subr.bf16.mxu1 %v678_v1  ;;  %v483_v57 = vld [vmem:[#allocation2] ss:$0 sm:$0xff] }
  0x47   :  { %518 = vmatpush3.bf16.msra.mxu0 %v581_v6  ;;  %538 = vmatpush3.bf16.msra.mxu1 %v590_v11 }
  0x48   :  { %519 = vmatprep.subr.bf16.mxu0 %v678_v1  ;;  %539 = vmatprep.subr.bf16.mxu1 %v678_v1 }
  0x4b   :  { %520 = vmatpush3.bf16.msra.mxu0 %v582_v8  ;;  %540 = vmatpush3.bf16.msra.mxu1 %v591_v13 }
  0x4c   :  { %521 = vmatprep.subr.bf16.mxu0 %v678_v1  ;;  %541 = vmatprep.subr.bf16.mxu1 %v678_v1 }
  0x4f   :  { %522 = vmatpush3.bf16.msra.mxu0 %v583_v10  ;;  %542 = vmatpush3.bf16.msra.mxu1 %v592_v15 }
  0x50   :  { %523 = vmatprep.subr.bf16.mxu0 %v678_v1  ;;  %543 = vmatprep.subr.bf16.mxu1 %v678_v1 }
  0x53   :  { %524 = vmatpush3.bf16.msra.mxu0 %v584_v12  ;;  %544 = vmatpush3.bf16.msra.mxu1 %v593_v17 }
  0x54   :  { %525 = vmatprep.subr.bf16.mxu0 %v678_v1  ;;  %545 = vmatprep.subr.bf16.mxu1 %v678_v1 }
  0x57   :  { %526 = vmatpush3.bf16.msra.mxu0 %v585_v14  ;;  %546 = vmatpush3.bf16.msra.mxu1 %v594_v18 }
  0x58   :  { %551 = vmatprep.subr.bf16.mxu0 %v678_v1 }
  0x5a   :  { %528 = vmatmul.mubr.bf16.vlgmr.msra.gmra.mrb[0].mxu0 %v586_v16 }
  0x5b   :  { %567 = vmatprep.mubr.msk.bf16.mxu0 %vm679_vm0, %v678_v1  ;;  %552 = vmatpush3.bf16.msra.mxu0 %v595_v19 }
  0x5c   :  { %553 = vmatprep.subr.bf16.mxu0 %v678_v1 }
  0x5f   :  { %554 = vmatpush3.bf16.msra.mxu0 %v596_v20 }
  0x60   :  { %555 = vmatprep.subr.bf16.mxu0 %v678_v1 }
  0x63   :  { %556 = vmatpush3.bf16.msra.mxu0 %v597_v21 }
  0x64   :  { %557 = vmatprep.subr.bf16.mxu0 %v678_v1 }
  0x67   :  { %558 = vmatpush3.bf16.msra.mxu0 %v598_v22 }
  0x68   :  { %559 = vmatprep.subr.bf16.mxu0 %v678_v1 }
  0x6b   :  { %560 = vmatpush3.bf16.msra.mxu0 %v599_v23 }
  0x6c   :  { %561 = vmatprep.subr.bf16.mxu0 %v678_v1 }
  0x6f   :  { %562 = vmatpush3.bf16.msra.mxu0 %v600_v24 }
  0x70   :  { %563 = vmatprep.subr.bf16.mxu0 %v678_v1 }
  0x73   :  { %564 = vmatpush3.bf16.msra.mxu0 %v601_v33 }
  0x74   :  { %565 = vmatprep.subr.bf16.mxu0 %v678_v1 }
  0x77   :  { %566 = vmatpush3.bf16.msra.mxu0 %v602_v34 }
 0x12d   :  { %v183_v26 = vpop.f32.mrb[0].mxu0 }
 0x12e   :  { %v529_v27 = vpop.f32.mrb[1].mxu0  ;;  %v184_v29 = vadd.f32 %v453_v25, %v183_v26 }
 0x12f   :  { %v186_v28 = vpop.f32.mrb[2].mxu0 }
 0x130   :  { %v187_v30 = vadd.f32 %v453_v25, %v186_v28  ;;  %v530_v31 = vpop.f32.mrb[3].mxu0 }
 0x132   :  { %v190_v32 = vpack.c.bf16 %v187_v30, %v184_v29 }
 0x134   :  { %548 = vmatmul.mubr.bf16.vlgmr.msra.gmra.mrb[0].mxu1 %v190_v32 }
 0x207   :  { %v296_v36 = vpop.f32.mrb[0].mxu1 }
 0x208   :  { %v297_v37 = vadd.f32 %v463_v35, %v296_v36  ;;  %v549_v38 = vpop.f32.mrb[1].mxu1 }
 0x209   :  { %v299_v39 = vpop.f32.mrb[2].mxu1 }
 0x20a   :  { %v300_v40 = vadd.f32 %v463_v35, %v299_v39  ;;  %v550_v41 = vpop.f32.mrb[3].mxu1  ;;  %v303_v42 = vmax.f32 %v297_v37, 0.0 }
 0x20c   :  { %v304_v43 = vmax.f32 %v300_v40, 0.0 }
 0x20e   :  { %v305_v44 = vpack.c.bf16 %v304_v43, %v303_v42 }
 0x210   :  { %568 = vmatmul.mubr.bf16.vlgmr.msra.gmra.mrb[4].mxu0 %v305_v44 }
 0x2e3   :  { %v413_v46 = vpop.f32.mrb[4].mxu0 }
 0x2e4   :  { %v414_v47 = vadd.f32 %v473_v45, %v413_v46  ;;  %v569_v48 = vpop.f32.mrb[5].mxu0 }
 0x2e5   :  { %v416_v49 = vpop.f32.mrb[6].mxu0 }
 0x2e6   :  { %v420_v51 = vmax.f32 %v414_v47, 0.0  ;;  %v417_v52 = vadd.f32 %v473_v45, %v416_v49  ;;  %v570_v53 = vpop.f32.mrb[7].mxu0 }
 0x2e8   :  { %v421_v54 = vmax.f32 %v417_v52, 0.0  ;;  %v429_v55 = vmul.f32 %v482_v50, %v420_v51 }
 0x2ea   :  { %431 = vadd.xlane.f32.xlu0 %v429_v55  ;;  %v430_v56 = vmul.f32 %v482_v50, %v421_v54 }
 0x2ee   :  { %433 = vadd.xlane.f32.xlu0 %v430_v56 }
 0x377   :  { %v432_v58 = vpop.xlane.xlu0 %431 }
 0x378   :  { %v442_v59 = vadd.f32 %v483_v57, %v432_v58 }
 0x37a   :  { %445 = vst.msk [vmem:[%s830_s7] sm:$0xff] %vm444_vm1, %v442_v59 }
 0x37b   :  { %v434_v60 = vpop.xlane.xlu0 %433 }
 0x37c   :  { %v443_v61 = vadd.f32 %v483_v57, %v434_v60 }
 0x37e   :  { %446 = vst.msk [vmem:[%s830_s7 + $0x8] sm:$0xff] %vm444_vm1, %v443_v61 }
 0x37f   :  { %451 = vsyncpa [#allocation4], 1 }
 0x380   :  { %452 = vsyncpa [#allocation6], 1 }

</bundles_post_ra>
